<compile_context>
chip_gen: v6e
topology: v6e:2x2x1
jax: 0.10.0
libtpu: 0.0.40
codegen_flags: <defaults>
</compile_context>

<pallas_src>
import jax
import jax.numpy as jnp
from jax import lax
from jax.experimental import pallas as pl
from jax.experimental.pallas import tpu as pltpu


def _embedding_classifier_kernel(x_ref, wa_ref, w2_ref, o_ref):
    # x_ref: (TB, S, D)   wa_ref: (D, D) = (out, in)   w2_ref: (C, D)   o_ref: (1, C, TB)
    TB, S, D = x_ref.shape

    x = x_ref[...]          # native dtype (bf16/f32) -> straight into the MXU
    wa = wa_ref[...]        # native dtype

    # attention_layer(x) == x @ W_attn.T : contract last dim of x with the "in" dim
    # of W; accumulate in f32 on the MXU.  No transpose is ever materialized.
    if S % 8 == 0:
        scores = lax.dot_general(
            x.reshape(TB * S, D), wa,
            dimension_numbers=(((1,), (1,)), ((), ())),
            preferred_element_type=jnp.float32,
        ).reshape(TB, S, D)
    else:
        # direct 3D contraction avoids a relayout copy when S isn't a sublane multiple
        scores = lax.dot_general(
            x, wa,
            dimension_numbers=(((2,), (1,)), ((), ())),
            preferred_element_type=jnp.float32,
        )                                                     # (TB, S, D) f32

    # softmax over S (PyTorch dim=2), numerically stable, fused with the pooling sum;
    # the softmax weights are never materialized: pooled = sum(e*x) / sum(e).
    m = jnp.max(scores, axis=1, keepdims=True)                # (TB, 1, D)
    e = jnp.exp(scores - m)                                   # (TB, S, D) f32
    denom = jnp.sum(e, axis=1)                                # (TB, D)   f32
    pooled = jnp.sum(e * x.astype(jnp.float32), axis=1)       # (TB, D)   f32

    # Reciprocal on the EUP slot + one Newton step (denom > 0, ~1e-6 rel accuracy).
    r = pl.reciprocal(denom, approx=True)
    r = r * (2.0 - denom * r)
    pooled = pooled * r                                       # (TB, D)

    # layer2(pooled) == pooled @ W2.T, produced transposed as (C, TB) so the per-step
    # store is lane-dense in TB.
    out_t = lax.dot_general(
        w2_ref[...], pooled.astype(w2_ref.dtype),
        dimension_numbers=(((1,), (1,)), ((), ())),
        preferred_element_type=jnp.float32,
    )                                                         # (C, TB) f32
    o_ref[0] = out_t.astype(o_ref.dtype)


def _vmem_capacity_bytes():
    """Physical VMEM per TensorCore (128 MiB v5e/v6e, 64 MiB v7x); safe fallback."""
    try:
        return int(pltpu.get_tpu_info().vmem_capacity_bytes)
    except Exception:
        return 64 << 20  # conservative: correct sizing even on v7x


def _vmem_limit_bytes():
    # ~3/4 of physical, capped at 64 MiB: v5e/v6e -> 64 MiB, v7x (64 MiB/TC) -> 48 MiB.
    return min(64 << 20, (_vmem_capacity_bytes() * 3) // 4)


def _pick_block_groups(G, S, D, itemsize):
    """Number of (S, D) groups processed per grid step."""
    budget = _vmem_limit_bytes()
    bytes_per_group = S * D * itemsize        # one (S, D) group of x in its own dtype
    f32_per_group = S * D * 4
    # Live VMEM per group: 2x double-buffered input tile + ~4 full-tile f32 temporaries
    # (scores, e, e*x, slack for the compiler).
    live_per_group = 2 * bytes_per_group + 4 * f32_per_group
    vmem_cap = max(1, budget // max(1, live_per_group))
    # ~4 MiB per x-tile buffer amortizes the ~0.35 us per-step overhead near roofline.
    target_cap = max(1, (4 << 20) // max(1, bytes_per_group))
    # Keep >= 4 grid steps so v7x's 2 TensorCores each get >= 2 tiles (DMA/compute
    # overlap per core); on 1-TC chips this just gives a deeper pipeline.
    steps_cap = max(1, -(-G // 4))
    tb = max(1, min(vmem_cap, target_cap, steps_cap))
    # Lane/sublane-friendly rounding: multiple of 128 when possible, else 8.
    if tb >= 128:
        tb = (tb // 128) * 128
    elif tb >= 8:
        tb = (tb // 8) * 8
    return tb


def embedding_classifier(x, w_attn, w2, *, block_groups=None):
    """x: (B, N, S, D); w_attn: (D, D); w2: (C, D) -> (B, N, 1, C)"""
    B, N, S, D = x.shape
    C = w2.shape[0]
    G = B * N

    TB = block_groups if block_groups is not None else _pick_block_groups(
        G, S, D, x.dtype.itemsize)
    num_tiles = pl.cdiv(G, TB)
    G_pad = num_tiles * TB

    xf = x.reshape(G, S, D)
    if G_pad != G:
        # zero padding on the group axis is benign: scores=0 -> uniform softmax,
        # pooled=0, logits=0; padded rows are dropped below.  (Never pad S this way.)
        xf = jnp.pad(xf, ((0, G_pad - G), (0, 0), (0, 0)))

    out = pl.pallas_call(
        _embedding_classifier_kernel,
        out_shape=jax.ShapeDtypeStruct((num_tiles, C, TB), jnp.float32),
        grid_spec=pltpu.PrefetchScalarGridSpec(
            num_scalar_prefetch=0,
            grid=(num_tiles,),
            in_specs=[
                pl.BlockSpec((TB, S, D), lambda i: (i, 0, 0)),
                pl.BlockSpec((D, D), lambda i: (0, 0)),
                pl.BlockSpec((C, D), lambda i: (0, 0)),
            ],
            out_specs=pl.BlockSpec((1, C, TB), lambda i: (i, 0, 0)),
        ),
        compiler_params=pltpu.CompilerParams(
            dimension_semantics=("parallel",),
            vmem_limit_bytes=_vmem_limit_bytes()),
    )(xf, w_attn, w2)

    # (num_tiles, C, TB) -> (G_pad, C) -> (B, N, 1, C)
    out = jnp.transpose(out, (0, 2, 1)).reshape(G_pad, C)[:G]
    return out.reshape(B, N, 1, C).astype(x.dtype)


def _reference(x, w_attn, w2):
    scores = jnp.einsum("bnsd,ed->bnse", x, w_attn)
    attn = jax.nn.softmax(scores, axis=2)
    pooled = jnp.sum(attn * x, axis=2, keepdims=True)
    return jnp.einsum("bnsd,cd->bnsc", pooled, w2)


if __name__ == "__main__":
    B, N, S, D = 2, 4, 8, 32   # small embedding_dim for the smoke test
    num_classes = 1

    key = jax.random.PRNGKey(0)
    kx, ka, k2 = jax.random.split(key, 3)

    x = jax.random.normal(kx, (B, N, S, D), dtype=jnp.float32)
    # PyTorch Linear convention: (out_features, in_features), no bias
    bound_a = 1.0 / (D ** 0.5)
    w_attn = jax.random.uniform(ka, (D, D), jnp.float32, -bound_a, bound_a)
    w2 = jax.random.uniform(k2, (num_classes, D), jnp.float32, -bound_a, bound_a)

    out = embedding_classifier(x, w_attn, w2)
    out = jax.block_until_ready(out)

    ref = _reference(x, w_attn, w2)
    assert out.shape == (B, N, 1, num_classes), out.shape
    assert jnp.allclose(out, ref, atol=1e-5, rtol=1e-5), "mismatch vs reference"

    print("KERNEL_OK")
</pallas_src>

<mosaic_0001>
module attributes {stable_mosaic.version = 11 : i64} {
  func.func @_embedding_classifier_kernel(%arg0: i32, %arg1: memref<2x8x32xf32, #tpu.memory_space<vmem>>, %arg2: memref<32x32xf32, #tpu.memory_space<vmem>>, %arg3: memref<1x32xf32, #tpu.memory_space<vmem>>, %arg4: memref<1x1x2xf32, #tpu.memory_space<vmem>>) attributes {dimension_semantics = [#tpu.dimension_semantics<parallel>], iteration_bounds = array<i64: 4>, scalar_prefetch = 0 : i64, scratch_operands = 0 : i64, tpu.core_type = #tpu.core_type<tc>, window_params = [{transform_indices = @transform_0, window_bounds = array<i64: 2, 8, 32>}, {pipeline_mode = #tpu.pipeline_mode<synchronous>, transform_indices = @transform_1, window_bounds = array<i64: 32, 32>}, {pipeline_mode = #tpu.pipeline_mode<synchronous>, transform_indices = @transform_2, window_bounds = array<i64: 1, 32>}, {transform_indices = @transform_3, window_bounds = array<i64: 1, 1, 2>}]} {
    %c0 = arith.constant 0 : index
    %c0_0 = arith.constant 0 : index
    %c0_1 = arith.constant 0 : index
    %0 = vector.load %arg1[%c0, %c0_0, %c0_1] : memref<2x8x32xf32, #tpu.memory_space<vmem>>, vector<2x8x32xf32>
    %c0_2 = arith.constant 0 : index
    %c0_3 = arith.constant 0 : index
    %1 = vector.load %arg2[%c0_2, %c0_3] : memref<32x32xf32, #tpu.memory_space<vmem>>, vector<32x32xf32>
    %2 = vector.shape_cast %0 : vector<2x8x32xf32> to vector<16x32xf32>
    %cst = arith.constant dense<0.000000e+00> : vector<16x32xf32>
    %3 = tpu.matmul %2, %1, %cst {dimension_numbers = #tpu.dot_dimension_numbers<[1], [1], [0], [0], [0, 0, 1, 0], [], []>} : vector<16x32xf32>, vector<32x32xf32>, vector<16x32xf32> -> vector<16x32xf32>
    %4 = vector.shape_cast %3 : vector<16x32xf32> to vector<2x8x32xf32>
    %cst_4 = arith.constant dense<0xFF800000> : vector<2x32xf32>
    %5 = vector.multi_reduction <maximumf>, %4, %cst_4 [1] : vector<2x8x32xf32> to vector<2x32xf32>
    %6 = vector.shape_cast %5 : vector<2x32xf32> to vector<2x1x32xf32>
    %7 = vector.broadcast %6 : vector<2x1x32xf32> to vector<2x8x32xf32>
    %8 = arith.subf %4, %7 : vector<2x8x32xf32>
    %9 = math.exp %8 : vector<2x8x32xf32>
    %cst_5 = arith.constant dense<0.000000e+00> : vector<2x32xf32>
    %10 = vector.multi_reduction <add>, %9, %cst_5 [1] : vector<2x8x32xf32> to vector<2x32xf32>
    %11 = arith.mulf %9, %0 : vector<2x8x32xf32>
    %cst_6 = arith.constant dense<0.000000e+00> : vector<2x32xf32>
    %12 = vector.multi_reduction <add>, %11, %cst_6 [1] : vector<2x8x32xf32> to vector<2x32xf32>
    %13 = tpu.reciprocal %10 {approx = true} : vector<2x32xf32> -> vector<2x32xf32>
    %14 = arith.mulf %10, %13 : vector<2x32xf32>
    %cst_7 = arith.constant 2.000000e+00 : f32
    %15 = vector.broadcast %cst_7 : f32 to vector<2x32xf32>
    %16 = arith.subf %15, %14 : vector<2x32xf32>
    %17 = arith.mulf %13, %16 : vector<2x32xf32>
    %18 = arith.mulf %12, %17 : vector<2x32xf32>
    %c0_8 = arith.constant 0 : index
    %c0_9 = arith.constant 0 : index
    %19 = vector.load %arg3[%c0_8, %c0_9] : memref<1x32xf32, #tpu.memory_space<vmem>>, vector<1x32xf32>
    %cst_10 = arith.constant dense<0.000000e+00> : vector<1x2xf32>
    %20 = tpu.matmul %19, %18, %cst_10 {dimension_numbers = #tpu.dot_dimension_numbers<[1], [1], [0], [0], [0, 0, 1, 0], [], []>} : vector<1x32xf32>, vector<2x32xf32>, vector<1x2xf32> -> vector<1x2xf32>
    %c0_11 = arith.constant 0 : index
    %c0_12 = arith.constant 0 : index
    %c0_13 = arith.constant 0 : index
    %21 = vector.load %arg4[%c0_11, %c0_12, %c0_13] : memref<1x1x2xf32, #tpu.memory_space<vmem>>, vector<1x1x2xf32>
    %22 = vector.shape_cast %21 : vector<1x1x2xf32> to vector<1x2xf32>
    %23 = vector.shape_cast %20 : vector<1x2xf32> to vector<1x1x2xf32>
    tpu.vector_store %arg4[%c0_11, %c0_12, %c0_13], %23 {strides = array<i32>} : memref<1x1x2xf32, #tpu.memory_space<vmem>>, vector<1x1x2xf32>,
    return
  }
  func.func @transform_0(%arg0: i32) -> (i32, i32, i32) {
    %c0_i32 = arith.constant 0 : i32
    %c0_i32_0 = arith.constant 0 : i32
    %c0_i32_1 = arith.constant 0 : i32
    return %arg0, %c0_i32, %c0_i32_0 : i32, i32, i32
  }
  func.func @transform_1(%arg0: i32) -> (i32, i32) {
    %c0_i32 = arith.constant 0 : i32
    %c0_i32_0 = arith.constant 0 : i32
    %c0_i32_1 = arith.constant 0 : i32
    return %c0_i32, %c0_i32_0 : i32, i32
  }
  func.func @transform_2(%arg0: i32) -> (i32, i32) {
    %c0_i32 = arith.constant 0 : i32
    %c0_i32_0 = arith.constant 0 : i32
    %c0_i32_1 = arith.constant 0 : i32
    return %c0_i32, %c0_i32_0 : i32, i32
  }
  func.func @transform_3(%arg0: i32) -> (i32, i32, i32) {
    %c0_i32 = arith.constant 0 : i32
    %c0_i32_0 = arith.constant 0 : i32
    %c0_i32_1 = arith.constant 0 : i32
    return %arg0, %c0_i32, %c0_i32_0 : i32, i32, i32
  }
}

</mosaic_0001>

<bundles_post_ra>
// kernel: tpu_custom_call.1
= control target key start
LH: loop header
LB: loop body
LE: loop exit
PB: predicated region body
PF: predicated region fallthrough
CT: control target
= control target key end

     0   :  { %8 = vsyncpa [#allocation3], 0  ;;  %s894_s0 = inlined_call_operand.hbm [shape: f32[8,8,32], index: 0, kind: input, shape index: {}]   ;;  %s895_s1 = inlined_call_operand.hbm [shape: f32[32,32], index: 1, kind: input, shape index: {}]   ;;  %s896_s2 = inlined_call_operand.vmem [shape: f32[1,32], index: 2, kind: input, shape index: {}]   ;;  %s897_s3 = inlined_call_operand.vmem [shape: f32[4,1,2], index: 3, kind: output, shape index: {}]  }
   0x1   :  { %10 = vsyncpa [#allocation3 + $0x1], 0 }
   0x2   :  { %11 = vsyncpa [#allocation5], 0  ;;  %s741_s12 = smov 0   ;;  %s743_s13 = smov 0  }
   0x3   :  { %s745_s14 = smov 0   ;;  %s747_s15 = smov 0  }
   0x4 LB: > { %s760_s16 = sadd.s32 4294967295, %s713_s15   ;;  %p37_p0 = scmp.ne.s32.totalorder %s705_s13, %s701_s12  ;;  %s713_s15 = sphi %s747_s15, %s912_s15   ;;  %s709_s14 = sphi %s745_s14, %s911_s14   ;;  %s705_s13 = sphi %s743_s13, %s910_s13   ;;  %s701_s12 = sphi %s741_s12, %s909_s12  }
   0x5   : > { %p898_p1 = scmp.eq.s32.totalorder %s760_s16, 0  ;;  %p515_p2 = scmp.ge.s32.totalorder %s713_s15, 1 }
   0x6   : > { %p116_p3 = scmp.lt.s32.totalorder %s713_s15, 5  ;;  %s715_s19 = smov [#allocation4]  }
   0x7   : > { %p768_p4 = por %p898_p1, %p37_p0  ;;  %s128_s20 = sshll.u32 %s715_s19, 4  ;;  %s129_s20 = int_to_ptr.vmem [resolvable:$true] %s128_s20 }
   0x8   : > { %p772_p5 = pnand %p515_p2, %p116_p3  ;;  %s785_s22 = sadd.s32 1, %s713_s15  }
   0x9   : > { %s901_s17 = scalar_select %p768_p4, 1, 0 }
   0xa   : > { %s902_s18 = scalar_select %p772_p5, 1, 0 }
   0xb   : > { %p565_p6 = pneg %p772_p5  ;;  %s24_s23 = sadd.s32 1, %s709_s14 }
   0xc   : > { %s21_s24 = ssub.s32 %s713_s15, %s785_s22  ;;  %s632_s25 = scalar_lea.vmem %s129_s20, 512 }
   0xd   : > { %p780_p7 = pnand %p565_p6, %p898_p1  ;;  %p633_p9 = scmp.ne.s32.totalorder %s129_s20, %s632_s25 }
   0xe   : > { %p640_p12 = scmp.lt.s32.totalorder %s129_s20, %s129_s20  ;;  %p641_p13 = scmp.lt.s32.totalorder %s632_s25, %s632_s25 }
   0xf   : > { %p623_p8 = pneg %p780_p7 }
  0x10   : > { %p642_p0 = por %p641_p13, %p640_p12 }
  0x11   : > { %p635_p10 = pnand %p633_p9, %p623_p8 }
  0x13   : > { %p636_p11 = pneg %p635_p10 }
  0x15   : > { %p643_p2 = pnand %p642_p0, %p636_p11 }
  0x17   : > { %646 = shalt.err (!%p643_p2)
}
  0x18   : > { %s716_s26 = smov 128   ;;  %s717_s27 = smov 8  }
  0x19   : > { %568 = dma.hbm_to_vmem [thread:$0]  (!%p780_p7), %s895_s1, 512, %s129_s20, [#allocation5], %s716_s26, %s716_s26, %s717_s27  }
  0x1a   : > { %p22_p3 = scmp.eq.s32.totalorder %s21_s24, 0  ;;  %p31_p6 = scmp.ne.s32.totalorder %s709_s14, %s705_s13 }
  0x1b   : > { %p32_p8 = scmp.eq.s32.totalorder %s713_s15, 0  ;;  %p574_p9 = scmp.lt.s32.totalorder %s713_s15, 4 }
  0x1c   : > { %s805_s30 = scalar_select %p22_p3, %s709_s14, %s24_s23  }
  0x1d   : > { %p33_p10 = por %p32_p8, %p31_p6  ;;  %s145_s4 = sand.u32 1, %s709_s14  }
  0x1e   : > { %s518_s5 = sshll.u32 %s145_s4, 4  ;;  %s534_s6 = sshll.u32 %s713_s15, 8 }
  0x1f   : > { %s812_s9 = scalar_lea.hbm %s894_s0, %s534_s6  ;;  %s149_s10 = scalar_lea.vmem [#allocation2], %s518_s5 }
  0x20   : > { %s156_s11 = sshll.u32 %s149_s10, 4  ;;  %p816_p7 = pnand %p574_p9, %p33_p10  ;;  %s814_s11 = int_to_ptr.vmem [resolvable:$true] %s156_s11 }
  0x21   : > { %s820_s19 = scalar_lea.sflag [#allocation3], %s145_s4  ;;  %s647_s15 = scalar_lea.hbm %s812_s9, 256 }
  0x22   : > { %p648_p11 = scmp.ne.s32.totalorder %s812_s9, %s647_s15  ;;  %p649_p12 = pneg %p816_p7 }
  0x23   : > { %s652_s23 = scalar_lea.hbm %s894_s0, 1024  ;;  %p653_p2 = scmp.lt.s32.totalorder %s812_s9, %s894_s0 }
  0x24   : > { %p650_p13 = pnand %p649_p12, %p648_p11  ;;  %p654_p3 = scmp.lt.s32.totalorder %s652_s23, %s647_s15 }
  0x26   : > { %p651_p0 = pneg %p650_p13  ;;  %p655_p6 = por %p654_p3, %p653_p2 }
  0x28   : > { %p656_p8 = pnand %p655_p6, %p651_p0 }
  0x2a   : > { %659 = shalt.err (!%p656_p8)
}
  0x2b   : > { %s660_s28 = scalar_lea.vmem %s814_s11, 256  ;;  %s718_s29 = smov [#allocation2]  }
  0x2c   : > { %p661_p9 = scmp.ne.s32.totalorder %s814_s11, %s660_s28  ;;  %s665_s4 = sshll.u32 %s718_s29, 4  ;;  %s666_s4 = int_to_ptr.vmem [resolvable:$false] %s665_s4 }
  0x2d   : > { %s667_s5 = scalar_lea.vmem %s666_s4, 512  ;;  %p668_p13 = scmp.lt.s32.totalorder %s814_s11, %s666_s4 }
  0x2e   : > { %p663_p10 = pnand %p661_p9, %p649_p12  ;;  %p669_p1 = scmp.lt.s32.totalorder %s667_s5, %s660_s28 }
  0x30   : > { %p664_p11 = pneg %p663_p10  ;;  %p670_p4 = por %p669_p1, %p668_p13 }
  0x32   : > { %p671_p5 = pnand %p670_p4, %p664_p11 }
  0x34   : > { %674 = shalt.err (!%p671_p5)
}
  0x35   : > { %572 = dma.hbm_to_vmem [thread:$0]  (!%p816_p7), %s812_s9, 256, %s814_s11, %s820_s19, %s716_s26, %s716_s26, %s717_s27  }
  0x36   : > { %p905_p12 = scmp.ne.s32.totalorder %s902_s18, 0 }
  0x37   : > { %s170_s6 = sand.u32 (!%p905_p12), 1, %s705_s13   ;;  %p906_p1 = scmp.ne.s32.totalorder (!%p905_p12), %s901_s17, 0 }
  0x38   : > { %168 = sbr.rel (%p905_p12) target bundleno = 542 (0x21e), region = 32  ;;  %s522_s7 = sshll.u32 (!%p905_p12), %s170_s6, 4 }
  0x39   : > { %s171_s8 = scalar_lea.sflag (!%p905_p12), [#allocation3], %s170_s6  ;;  %s174_s10 = scalar_lea.vmem (!%p905_p12), [#allocation2], %s522_s7 }
  0x3d   : > { %692 = dma.done.wait (%p906_p1), %s171_s8, 256  }
  0x3e   : > { %694 = vsyncadd (%p906_p1), %s171_s8, 4294967040  ;;  %p907_p4 = scmp.eq.s32.totalorder %s760_s16, 0 }
  0x40   : > { %696 = dma.done.wait (%p907_p4), [#allocation5], 512   ;;  %p908_p5 = pmov %p907_p4 }
  0x41   : > { %vm209_vm0 = vcmask 261120   ;;  %v208_v0 = vld [vmem:[#allocation4 + $0x18] sm:$0xff]  ;;  %v207_v1 = vld [vmem:[#allocation4 + $0x10] sm:$0xff]  ;;  %v206_v3 = vld [vmem:[#allocation4 + $0x8] sm:$0xff]  ;;  %v719_v6 = vmov 0.0   ;;  %vm720_vm1 = vmmov 0  }
  0x42   : > { %698 = vsyncadd (%p908_p5), [#allocation5], 4294966784  ;;  %543 = vmatprep.subr.msk.mxu0 %vm209_vm0, %v208_v0  ;;  %v203_v2 = vld [vmem:[%s174_s10] sm:$0xff]  ;;  %v204_v5 = vld [vmem:[%s174_s10 + $0x8] sm:$0xff]  ;;  %554 = vmatprep.subr.mxu1 %v719_v6  ;;  %vm366_vm2 = vcmask 1041409   ;;  %p200_p7 = scmp.lt.s32.totalorder %s760_s16, 3 }
  0x43   : > { %544 = vmatpush3.xpose.msk.msra.mxu0 %vm209_vm0, %v208_v0  ;;  %551 = vmatprep.mubr.msk.f32.mxu0 %vm209_vm0, %v203_v2  ;;  %v205_v4 = vld [vmem:[#allocation4] sm:$0xff]  ;;  %vm443_vm3 = vcmask 8192  }
  0x44   : > { %545 = vmatprep.subr.msk.mxu0 %vm209_vm0, %v207_v1  ;;  %556 = vmatprep.mubr.msk.f32.mxu1 %vm720_vm1, %v719_v6  ;;  %v363_v6 = vld [vmem:[%s896_s2] sm:$0x1]  ;;  %s914_s16 = smov (!%p200_p7, %s760_s16), 3 }
  0x45   : > { %s202_s9 = scalar_lea.vmem %s897_s3, %s914_s16 }
  0x47   : > { %546 = vmatpush3.xpose.msk.msra.mxu0 %vm209_vm0, %v207_v1 }
  0x48   : > { %547 = vmatprep.subr.msk.mxu0 %vm209_vm0, %v206_v3 }
  0x4b   : > { %548 = vmatpush3.xpose.msk.msra.mxu0 %vm209_vm0, %v206_v3 }
  0x4c   : > { %549 = vmatprep.subr.msk.mxu0 %vm209_vm0, %v205_v4 }
  0x4f   : > { %550 = vmatpush3.xpose.msk.msra.mxu0 %vm209_vm0, %v205_v4 }
  0x52   : > { %552 = vmatmul.mubr.msk.f32.vlgmr.msra.gmra.mxu0 %vm209_vm0, %v204_v5 }
 0x112   : > { %v553_v7 = vpop.f32.mrf.mxu0 }
 0x113   : > { %v310_v8 = vsel %vm209_vm0, %v553_v7, -inf }
 0x114   : > { %v311_v9 = vrot.slane %v310_v8, 4  ;;  %v294_v10 = vpop.f32.mrf.mxu0 }
 0x115   : > { %v303_v11 = vsel %vm209_vm0, %v294_v10, -inf }
 0x116   : > { %v312_v12 = vmax.f32 %v310_v8, %v311_v9  ;;  %v304_v13 = vrot.slane %v303_v11, 4 }
 0x118   : > { %v313_v14 = vrot.slane %v312_v12, 2  ;;  %v305_v15 = vmax.f32 %v303_v11, %v304_v13 }
 0x11a   : > { %v314_v16 = vmax.f32 %v312_v12, %v313_v14  ;;  %v306_v17 = vrot.slane %v305_v15, 2 }
 0x11c   : > { %v315_v18 = vrot.slane %v314_v16, 1  ;;  %v307_v19 = vmax.f32 %v305_v15, %v306_v17 }
 0x11e   : > { %v316_v20 = vmax.f32 %v314_v16, %v315_v18  ;;  %v308_v21 = vrot.slane %v307_v19, 1 }
 0x120   : > { %v318_v22 = vsub.f32 %v553_v7, %v316_v20  ;;  %v309_v23 = vmax.f32 %v307_v19, %v308_v21 }
 0x122   : > { %v321_v24 = vmul.f32 1.442695, %v318_v22  ;;  %v317_v25 = vsub.f32 %v294_v10, %v309_v23 }
 0x124   : > { %613 = vpow2.f32 %v321_v24  ;;  %v319_v26 = vmul.f32 1.442695, %v317_v25 }
 0x126   : > { %615 = vpow2.f32 %v319_v26 }
 0x131   : > { %v614_v27 = vpop.eup %613 }
 0x132   : > { %v330_v28 = vsel %vm209_vm0, %v614_v27, 0.0  ;;  %v338_v37 = vmul.f32 %v614_v27, %v204_v5 }
 0x133   : > { %v616_v29 = vpop.eup %615  ;;  %v331_v30 = vrot.slane %v330_v28, 4 }
 0x134   : > { %v323_v31 = vsel %vm209_vm0, %v616_v29, 0.0  ;;  %v337_v36 = vmul.f32 %v616_v29, %v203_v2  ;;  %v346_v43 = vsel %vm209_vm0, %v338_v37, 0.0 }
 0x135   : > { %v324_v32 = vrot.slane %v323_v31, 4  ;;  %v332_v33 = vadd.f32 %v331_v30, %v330_v28  ;;  %v347_v48 = vrot.slane %v346_v43, 4 }
 0x136   : > { %v339_v42 = vsel %vm209_vm0, %v337_v36, 0.0 }
 0x137   : > { %v325_v34 = vadd.f32 %v324_v32, %v323_v31  ;;  %v333_v35 = vrot.slane %v332_v33, 2  ;;  %v340_v47 = vrot.slane %v339_v42, 4  ;;  %v348_v50 = vadd.f32 %v347_v48, %v346_v43 }
 0x139   : > { %v326_v38 = vrot.slane %v325_v34, 2  ;;  %v334_v39 = vadd.f32 %v333_v35, %v332_v33  ;;  %v341_v49 = vadd.f32 %v340_v47, %v339_v42  ;;  %v349_v52 = vrot.slane %v348_v50, 2 }
 0x13b   : > { %v327_v40 = vadd.f32 %v326_v38, %v325_v34  ;;  %v335_v41 = vrot.slane %v334_v39, 1  ;;  %v342_v51 = vrot.slane %v341_v49, 2  ;;  %v350_v54 = vadd.f32 %v349_v52, %v348_v50 }
 0x13d   : > { %v328_v44 = vrot.slane %v327_v40, 1  ;;  %v336_v45 = vadd.f32 %v335_v41, %v334_v39  ;;  %v343_v53 = vadd.f32 %v342_v51, %v341_v49  ;;  %v351_v59 = vrot.slane %v350_v54, 1 }
 0x13f   : > { %v329_v46 = vadd.f32 %v328_v44, %v327_v40  ;;  %617 = vrcp.f32 %v336_v45  ;;  %v344_v58 = vrot.slane %v343_v53, 1  ;;  %v352_v1 = vadd.f32 %v351_v59, %v350_v54 }
 0x141   : > { %619 = vrcp.f32 %v329_v46  ;;  %v345_v0 = vadd.f32 %v344_v58, %v343_v53 }
 0x14c   : > { %v618_v55 = vpop.eup %617 }
 0x14d   : > { %v356_v56 = vmul.f32 %v618_v55, %v336_v45 }
 0x14e   : > { %v620_v57 = vpop.eup %619 }
 0x14f   : > { %v355_v60 = vmul.f32 %v620_v57, %v329_v46  ;;  %v358_v61 = vsub.f32 2.0, %v356_v56 }
 0x151   : > { %v357_v62 = vsub.f32 2.0, %v355_v60  ;;  %v360_v63 = vmul.f32 %v618_v55, %v358_v61 }
 0x153   : > { %v359_v2 = vmul.f32 %v620_v57, %v357_v62  ;;  %v362_v4 = vmul.f32 %v360_v63, %v352_v1 }
 0x155   : > { %v361_v3 = vmul.f32 %v359_v2, %v345_v0 }
 0x157   : > { %v367_v5 = vsel %vm366_vm2, %v362_v4, %v361_v3 }
 0x158   : > { %555 = vmatpush3.xpose.msk.msra.mxu1 %vm209_vm0, %v367_v5 }
 0x15b   : > { %557 = vmatmul.mubr.msk.f32.vlgmr.msra.gmra.mxu1 %vm209_vm0, %v363_v6 }
 0x21b   : > { %v439_v7 = vpop.f32.mrf.mxu1 }
 0x21c   : > { %444 = vst.msk [vmem:[%s202_s9] sm:$0x1] %vm443_vm3, %v439_v7 }
 0x21d   : > { %v558_v8 = vpop.f32.mrf.mxu1 }
 0x21e PF: > { %p14_p0 = scmp.ge.s32.totalorder %s785_s22, 6   ;;  %s909_s12 = smov %s705_s13 }
 0x21f   : > { %s910_s13 = smov %s709_s14  ;;  %s911_s14 = smov %s805_s30 }
 0x220   : > { %s912_s15 = smov %s785_s22  ;;  %16 = sbr.rel (!%p14_p0) target bundleno = 4 (0x4), region = 76 }
 0x225   :  { %462 = vsyncpa [#allocation3], 1 }
 0x226   :  { %464 = vsyncpa [#allocation3 + $0x1], 1 }
 0x227   :  { %465 = vsyncpa [#allocation5], 1 }

</bundles_post_ra>
